<compile_context>
chip_gen: v6e
topology: v6e:2x2x1
jax: 0.10.0
libtpu: 0.0.40
codegen_flags: <defaults>
</compile_context>

<pallas_src>
import functools

import jax
import jax.numpy as jnp
from jax.experimental import pallas as pl
from jax.experimental.pallas import tpu as pltpu


def _round_up(x, m):
    return ((x + m - 1) // m) * m


def _choose_batch_block(B):
    """Largest BB <= 8 that divides B while keeping >= 2 grid steps (v7x)."""
    if B <= 1:
        return 1
    best = 1
    for bb in range(1, min(8, B) + 1):
        if B % bb == 0 and B // bb >= 2:
            best = bb
    return best


def _vmem_budget_bytes(BB, HW, Kp, Fp, Ep):
    bf16, f32 = 2, 4
    patches = 2 * BB * HW * Kp * bf16          # double-buffered input block
    wc = 2 * Kp * Fp * bf16                    # conv weight (resident, 2 bufs)
    we = 2 * Fp * Ep * bf16                    # embed weight
    biases = 2 * 8 * (Fp + Ep) * f32
    outb = 2 * 8 * Ep * f32
    temps = 4 * BB * HW * Fp * f32             # conv + outlier temporaries
    total = patches + wc + we + biases + outb + temps
    return int(min(max(2 * total, 4 << 20), 64 << 20))


# ---------------------------------------------------------------------------
# Fused kernel: im2col-matmul conv3x3 + ReLU -> pooling -> NaN fixup ->
# embedder linear.  One grid step == BB batch elements.
# ---------------------------------------------------------------------------
def _fused_kernel(thr_ref, p_ref, wc_ref, bc_ref, we_ref, be_ref, o_ref,
                  *, mode, hw):
    BB, HW, Kp = p_ref.shape                    # (BB, H*W, 128) bf16 patches
    Fp = wc_ref.shape[1]                        # lane-padded feature count

    # ---- conv: ONE dense MXU dot over the whole batch block ----
    patches = p_ref[...].reshape(BB * HW, Kp)               # bf16, lane-dense
    conv = jnp.dot(patches, wc_ref[...],
                   preferred_element_type=jnp.float32)      # (BB*HW, Fp) f32
    conv = jnp.maximum(conv + bc_ref[...], 0.0)
    conv = conv.reshape(BB, HW, Fp)

    # ---- pooling over the flattened spatial axis ----
    if mode == "avg":
        pooled = jnp.sum(conv, axis=1) * (1.0 / hw)          # (BB, Fp)
    elif mode == "max":
        pooled = jnp.max(conv, axis=1)
    else:
        # outlier / dynamic_outlier / switch_outlier pooling:
        # mean of activations >= mean + thr_scale * std (unbiased std).
        # TODO(synk): dynamic_threshold / dynamic_outlier_pooling bodies are
        # not defined in the provided file; this is an assumed formulation.
        scale = thr_ref[0]                                   # SMEM scalar
        s1 = jnp.sum(conv, axis=1)                           # (BB, Fp)
        s2 = jnp.sum(conv * conv, axis=1)
        mean = s1 * (1.0 / hw)
        inv_nm1 = 1.0 / max(hw - 1, 1)
        var = jnp.maximum((s2 - hw * mean * mean) * inv_nm1, 0.0)
        thr = (mean + scale * jnp.sqrt(var))[:, None, :]     # (BB, 1, Fp)
        keep = conv >= thr
        ssum = jnp.sum(jnp.where(keep, conv, 0.0), axis=1)   # fused masking
        cnt = jnp.sum(jnp.where(keep, 1.0, 0.0), axis=1)
        # 0/0 -> NaN in the torch reference, which is then set to 0; exact
        # division on the tiny (BB, Fp) vector is essentially free.
        pooled = jnp.where(cnt > 0.0, ssum / jnp.maximum(cnt, 1.0), 0.0)

    # features[torch.isnan(features)] = 0.0
    pooled = jnp.where(jnp.isnan(pooled), 0.0, pooled)

    # ---- embedder: Linear(F, E) on features.view(batch, -1) ----
    out = jnp.dot(pooled.astype(jnp.bfloat16), we_ref[...],
                  preferred_element_type=jnp.float32) + be_ref[...]
    o_ref[...] = out.reshape(o_ref.shape).astype(o_ref.dtype)


def fused_conv_pool_embed(patches, w_conv, b_conv, w_embed, b_embed,
                          thr_scale, *, mode, hw, batch_block):
    """patches: (B, H*W, Kp) bf16 im2col matrix (contraction zero-padded).
    w_conv: (Kp, Fp) bf16; b_conv: (1, Fp) f32; w_embed: (Fp, Ep) bf16;
    b_embed: (1, Ep) f32; thr_scale: (1,) f32 runtime scalar.
    Returns (B, Ep) f32."""
    B, HW, Kp = patches.shape
    Fp = w_conv.shape[1]
    Ep = w_embed.shape[1]
    BB = batch_block
    assert B % BB == 0
    G = B // BB

    kern = functools.partial(_fused_kernel, mode=mode, hw=hw)
    out = pl.pallas_call(
        kern,
        # 3-D output so the block's last two dims equal the full array dims.
        out_shape=jax.ShapeDtypeStruct((G, BB, Ep), jnp.float32),
        grid=(G,),
        in_specs=[
            # runtime threshold scale lives in SMEM -> no recompile per epoch
            pl.BlockSpec(memory_space=pltpu.MemorySpace.SMEM),
            # per-step batch block of im2col patches (lane-dense, bf16)
            pl.BlockSpec((BB, HW, Kp), lambda g: (g, 0, 0)),
            # weights/biases: constant block index -> stay resident in VMEM
            pl.BlockSpec((Kp, Fp), lambda g: (0, 0)),
            pl.BlockSpec((1, Fp), lambda g: (0, 0)),
            pl.BlockSpec((Fp, Ep), lambda g: (0, 0)),
            pl.BlockSpec((1, Ep), lambda g: (0, 0)),
        ],
        out_specs=pl.BlockSpec((1, BB, Ep), lambda g: (g, 0, 0)),
        compiler_params=pltpu.CompilerParams(
            # grid kept >= 2 steps so both v7x TensorCores get work
            dimension_semantics=("parallel",),
            vmem_limit_bytes=_vmem_budget_bytes(BB, HW, Kp, Fp, Ep),
        ),
    )(thr_scale, patches, w_conv, b_conv, w_embed, b_embed)
    return out.reshape(B, Ep)


# ---------------------------------------------------------------------------
# Model wrapper (mirrors the PyTorch Module's __init__ / forward / pooling)
# ---------------------------------------------------------------------------
class ModelPallas:
    def __init__(self, **kwargs):
        self.dropout = kwargs["dropout"]
        self.max_epochs = kwargs["max_epochs"]
        self.train_type = kwargs["train_type"]
        self.switch_epoch = kwargs["switch_epoch"]
        self.threshold_parameter = kwargs["threshold_parameter"]
        self.current_epoch = 0
        self.pooling_method = kwargs["pooling_type"]
        self.training = False  # eval mode
        # TODO(synk): f.dropout in training mode is not applied (eval path).

        self.in_channels = kwargs["in_channels"]
        self.num_features = kwargs["num_features"]
        self.embed_dim = kwargs["embed_dim"]
        C, F, E = self.in_channels, self.num_features, self.embed_dim
        self.Kp = _round_up(9 * C, 128)
        Fp, Ep = _round_up(F, 128), _round_up(E, 128)

        k0, k1, k2, k3 = jax.random.split(jax.random.PRNGKey(42), 4)
        # trunk: Conv2d(in_ch, num_features, 3, padding=1) + ReLU
        # NOTE: weight rows are (kh, kw, c)-flattened; importing trained
        # PyTorch weights (F, C, kh, kw) would require
        # w.transpose(2, 3, 1, 0).reshape(9*C, F).
        w_conv = 0.1 * jax.random.normal(k0, (9 * C, F), jnp.float32)
        b_conv = 0.01 * jax.random.normal(k1, (F,), jnp.float32)
        # embedder: Linear(num_features, embed_dim)
        w_embed = 0.1 * jax.random.normal(k2, (F, E), jnp.float32)
        b_embed = 0.01 * jax.random.normal(k3, (E,), jnp.float32)

        # Zero-pad contraction / feature / embed dims to lane-dense multiples
        # of 128.  Padded rows/cols are zero, so the maths is unchanged.
        self.w_conv = jnp.pad(
            w_conv, ((0, self.Kp - 9 * C), (0, Fp - F))).astype(jnp.bfloat16)
        self.b_conv = jnp.pad(b_conv, (0, Fp - F)).reshape(1, Fp)
        self.w_embed = jnp.pad(
            w_embed, ((0, Fp - F), (0, Ep - E))).astype(jnp.bfloat16)
        self.b_embed = jnp.pad(b_embed, (0, Ep - E)).reshape(1, Ep)

    def _pool_mode_and_scale(self):
        m = self.pooling_method.lower()
        frac = self.current_epoch / float(self.max_epochs)
        dyn_scale = self.threshold_parameter * (1.0 - frac)
        if m == "avg":
            return "avg", 0.0
        if m == "max":
            return "max", 0.0
        if m == "switch_outlier":
            if self.current_epoch < self.switch_epoch:
                return "avg", 0.0
            return "outlier", dyn_scale
        if m == "outlier":
            return "outlier", dyn_scale
        # 'dynamic_outlier' and default branch
        return "outlier", dyn_scale

    def _im2col(self, data_nchw):
        """NCHW -> zero-padded bf16 im2col patches (B, H*W, Kp)."""
        B, C, H, W = data_nchw.shape
        x = jnp.transpose(data_nchw, (0, 2, 3, 1)).astype(jnp.float32)
        xp = jnp.pad(x, ((0, 0), (1, 1), (1, 1), (0, 0)))     # SAME padding
        taps = [xp[:, di:di + H, dj:dj + W, :]
                for di in range(3) for dj in range(3)]
        patches = jnp.concatenate(taps, axis=-1)              # (B, H, W, 9C)
        patches = patches.reshape(B, H * W, 9 * C)
        patches = jnp.pad(patches, ((0, 0), (0, 0), (0, self.Kp - 9 * C)))
        return patches.astype(jnp.bfloat16)

    def forward(self, data_nchw):
        B, C, H, W = data_nchw.shape
        patches = self._im2col(data_nchw)                     # (B, HW, Kp)
        mode, scale = self._pool_mode_and_scale()
        thr = jnp.full((1,), scale, jnp.float32)              # SMEM scalar
        bb = _choose_batch_block(B)
        out = fused_conv_pool_embed(
            patches, self.w_conv, self.b_conv, self.w_embed, self.b_embed,
            thr, mode=mode, hw=H * W, batch_block=bb)
        return out[:, :self.embed_dim]

    __call__ = forward


if __name__ == "__main__":
    B, C, H, W = 2, 4, 16, 16
    NUM_FEATURES, EMBED_DIM = 32, 16

    model = ModelPallas(
        dropout=0.1,
        max_epochs=10,
        train_type="standard",
        switch_epoch=5,
        threshold_parameter=1.0,
        pooling_type="outlier",
        in_channels=C,
        num_features=NUM_FEATURES,
        embed_dim=EMBED_DIM,
    )

    x = jax.random.normal(jax.random.PRNGKey(0), (B, C, H, W), jnp.float32)
    out = jax.block_until_ready(model(x))
    assert out.shape == (B, EMBED_DIM)
    assert bool(jnp.all(jnp.isfinite(out)))
    print("KERNEL_OK")
</pallas_src>

<mosaic_0001>
module attributes {stable_mosaic.version = 11 : i64} {
  func.func @_fused_kernel(%arg0: i32, %arg1: memref<1xf32, #tpu.memory_space<smem>>, %arg2: memref<1x256x128xbf16, #tpu.memory_space<vmem>>, %arg3: memref<128x128xbf16, #tpu.memory_space<vmem>>, %arg4: memref<1x128xf32, #tpu.memory_space<vmem>>, %arg5: memref<128x128xbf16, #tpu.memory_space<vmem>>, %arg6: memref<1x128xf32, #tpu.memory_space<vmem>>, %arg7: memref<1x1x128xf32, #tpu.memory_space<vmem>>) attributes {dimension_semantics = [#tpu.dimension_semantics<parallel>], iteration_bounds = array<i64: 2>, scalar_prefetch = 0 : i64, scratch_operands = 0 : i64, tpu.core_type = #tpu.core_type<tc>, window_params = [{transform_indices = @transform_0, window_bounds = array<i64: 1>}, {transform_indices = @transform_1, window_bounds = array<i64: 1, 256, 128>}, {pipeline_mode = #tpu.pipeline_mode<synchronous>, transform_indices = @transform_2, window_bounds = array<i64: 128, 128>}, {pipeline_mode = #tpu.pipeline_mode<synchronous>, transform_indices = @transform_3, window_bounds = array<i64: 1, 128>}, {pipeline_mode = #tpu.pipeline_mode<synchronous>, transform_indices = @transform_4, window_bounds = array<i64: 128, 128>}, {pipeline_mode = #tpu.pipeline_mode<synchronous>, transform_indices = @transform_5, window_bounds = array<i64: 1, 128>}, {transform_indices = @transform_6, window_bounds = array<i64: 1, 1, 128>}]} {
    %c0 = arith.constant 0 : index
    %c0_0 = arith.constant 0 : index
    %c0_1 = arith.constant 0 : index
    %0 = vector.load %arg2[%c0, %c0_0, %c0_1] : memref<1x256x128xbf16, #tpu.memory_space<vmem>>, vector<1x256x128xbf16>
    %1 = vector.shape_cast %0 : vector<1x256x128xbf16> to vector<256x128xbf16>
    %c0_2 = arith.constant 0 : index
    %c0_3 = arith.constant 0 : index
    %2 = vector.load %arg3[%c0_2, %c0_3] : memref<128x128xbf16, #tpu.memory_space<vmem>>, vector<128x128xbf16>
    %cst = arith.constant dense<0.000000e+00> : vector<256x128xf32>
    %3 = tpu.matmul %1, %2, %cst {dimension_numbers = #tpu.dot_dimension_numbers<[1], [0], [0], [1], [0, 0, 1, 1], [], []>} : vector<256x128xbf16>, vector<128x128xbf16>, vector<256x128xf32> -> vector<256x128xf32>
    %c0_4 = arith.constant 0 : index
    %c0_5 = arith.constant 0 : index
    %4 = vector.load %arg4[%c0_4, %c0_5] : memref<1x128xf32, #tpu.memory_space<vmem>>, vector<1x128xf32>
    %5 = vector.broadcast %4 : vector<1x128xf32> to vector<256x128xf32>
    %6 = arith.addf %3, %5 : vector<256x128xf32>
    %cst_6 = arith.constant 0.000000e+00 : f32
    %7 = vector.broadcast %cst_6 : f32 to vector<256x128xf32>
    %8 = arith.maximumf %6, %7 : vector<256x128xf32>
    %9 = vector.shape_cast %8 : vector<256x128xf32> to vector<1x256x128xf32>
    %c0_7 = arith.constant 0 : index
    %10 = memref.load %arg1[%c0_7] : memref<1xf32, #tpu.memory_space<smem>>
    %cst_8 = arith.constant dense<0.000000e+00> : vector<1x128xf32>
    %11 = vector.multi_reduction <add>, %9, %cst_8 [1] : vector<1x256x128xf32> to vector<1x128xf32>
    %12 = arith.mulf %9, %9 : vector<1x256x128xf32>
    %cst_9 = arith.constant dense<0.000000e+00> : vector<1x128xf32>
    %13 = vector.multi_reduction <add>, %12, %cst_9 [1] : vector<1x256x128xf32> to vector<1x128xf32>
    %cst_10 = arith.constant 3.906250e-03 : f32
    %14 = vector.broadcast %cst_10 : f32 to vector<1x128xf32>
    %15 = arith.mulf %11, %14 : vector<1x128xf32>
    %cst_11 = arith.constant 2.560000e+02 : f32
    %16 = vector.broadcast %cst_11 : f32 to vector<1x128xf32>
    %17 = arith.mulf %16, %15 : vector<1x128xf32>
    %18 = arith.mulf %17, %15 : vector<1x128xf32>
    %19 = arith.subf %13, %18 : vector<1x128xf32>
    %cst_12 = arith.constant 0.00392156886 : f32
    %20 = vector.broadcast %cst_12 : f32 to vector<1x128xf32>
    %21 = arith.mulf %19, %20 : vector<1x128xf32>
    %cst_13 = arith.constant 0.000000e+00 : f32
    %22 = vector.broadcast %cst_13 : f32 to vector<1x128xf32>
    %23 = arith.maximumf %21, %22 : vector<1x128xf32>
    %24 = math.sqrt %23 : vector<1x128xf32>
    %25 = vector.broadcast %10 : f32 to vector<1x128xf32>
    %26 = arith.mulf %25, %24 : vector<1x128xf32>
    %27 = arith.addf %15, %26 : vector<1x128xf32>
    %28 = vector.shape_cast %27 : vector<1x128xf32> to vector<1x1x128xf32>
    %29 = vector.broadcast %28 : vector<1x1x128xf32> to vector<1x256x128xf32>
    %30 = arith.cmpf oge, %9, %29 : vector<1x256x128xf32>
    %cst_14 = arith.constant 0.000000e+00 : f32
    %31 = vector.broadcast %cst_14 : f32 to vector<1x256x128xf32>
    %32 = arith.select %30, %9, %31 : vector<1x256x128xi1>, vector<1x256x128xf32>
    %cst_15 = arith.constant dense<0.000000e+00> : vector<1x128xf32>
    %33 = vector.multi_reduction <add>, %32, %cst_15 [1] : vector<1x256x128xf32> to vector<1x128xf32>
    %cst_16 = arith.constant 1.000000e+00 : f32
    %cst_17 = arith.constant 0.000000e+00 : f32
    %34 = vector.broadcast %cst_16 : f32 to vector<1x256x128xf32>
    %35 = vector.broadcast %cst_17 : f32 to vector<1x256x128xf32>
    %36 = arith.select %30, %34, %35 : vector<1x256x128xi1>, vector<1x256x128xf32>
    %cst_18 = arith.constant dense<0.000000e+00> : vector<1x128xf32>
    %37 = vector.multi_reduction <add>, %36, %cst_18 [1] : vector<1x256x128xf32> to vector<1x128xf32>
    %cst_19 = arith.constant 0.000000e+00 : f32
    %38 = vector.broadcast %cst_19 : f32 to vector<1x128xf32>
    %39 = arith.cmpf ogt, %37, %38 : vector<1x128xf32>
    %cst_20 = arith.constant 1.000000e+00 : f32
    %40 = vector.broadcast %cst_20 : f32 to vector<1x128xf32>
    %41 = arith.maximumf %37, %40 : vector<1x128xf32>
    %42 = arith.divf %33, %41 : vector<1x128xf32>
    %cst_21 = arith.constant 0.000000e+00 : f32
    %43 = vector.broadcast %cst_21 : f32 to vector<1x128xf32>
    %44 = arith.select %39, %42, %43 : vector<1x128xi1>, vector<1x128xf32>
    %45 = arith.cmpf one, %44, %44 : vector<1x128xf32>
    %cst_22 = arith.constant 0.000000e+00 : f32
    %46 = vector.broadcast %cst_22 : f32 to vector<1x128xf32>
    %47 = arith.select %45, %46, %44 : vector<1x128xi1>, vector<1x128xf32>
    %48 = arith.truncf %47 : vector<1x128xf32> to vector<1x128xbf16>
    %c0_23 = arith.constant 0 : index
    %c0_24 = arith.constant 0 : index
    %49 = vector.load %arg5[%c0_23, %c0_24] : memref<128x128xbf16, #tpu.memory_space<vmem>>, vector<128x128xbf16>
    %cst_25 = arith.constant dense<0.000000e+00> : vector<1x128xf32>
    %50 = tpu.matmul %48, %49, %cst_25 {dimension_numbers = #tpu.dot_dimension_numbers<[1], [0], [0], [1], [0, 0, 1, 1], [], []>} : vector<1x128xbf16>, vector<128x128xbf16>, vector<1x128xf32> -> vector<1x128xf32>
    %c0_26 = arith.constant 0 : index
    %c0_27 = arith.constant 0 : index
    %51 = vector.load %arg6[%c0_26, %c0_27] : memref<1x128xf32, #tpu.memory_space<vmem>>, vector<1x128xf32>
    %52 = arith.addf %50, %51 : vector<1x128xf32>
    %53 = vector.shape_cast %52 : vector<1x128xf32> to vector<1x1x128xf32>
    %c0_28 = arith.constant 0 : index
    %c0_29 = arith.constant 0 : index
    %c0_30 = arith.constant 0 : index
    %54 = vector.load %arg7[%c0_28, %c0_29, %c0_30] : memref<1x1x128xf32, #tpu.memory_space<vmem>>, vector<1x1x128xf32>
    tpu.vector_store %arg7[%c0_28, %c0_29, %c0_30], %53 {strides = array<i32>} : memref<1x1x128xf32, #tpu.memory_space<vmem>>, vector<1x1x128xf32>,
    return
  }
  func.func @transform_0(%arg0: i32) -> i32 {
    %c0_i32 = arith.constant 0 : i32
    %c0_i32_0 = arith.constant 0 : i32
    return %c0_i32 : i32
  }
  func.func @transform_1(%arg0: i32) -> (i32, i32, i32) {
    %c0_i32 = arith.constant 0 : i32
    %c0_i32_0 = arith.constant 0 : i32
    %c0_i32_1 = arith.constant 0 : i32
    return %arg0, %c0_i32, %c0_i32_0 : i32, i32, i32
  }
  func.func @transform_2(%arg0: i32) -> (i32, i32) {
    %c0_i32 = arith.constant 0 : i32
    %c0_i32_0 = arith.constant 0 : i32
    %c0_i32_1 = arith.constant 0 : i32
    return %c0_i32, %c0_i32_0 : i32, i32
  }
  func.func @transform_3(%arg0: i32) -> (i32, i32) {
    %c0_i32 = arith.constant 0 : i32
    %c0_i32_0 = arith.constant 0 : i32
    %c0_i32_1 = arith.constant 0 : i32
    return %c0_i32, %c0_i32_0 : i32, i32
  }
  func.func @transform_4(%arg0: i32) -> (i32, i32) {
    %c0_i32 = arith.constant 0 : i32
    %c0_i32_0 = arith.constant 0 : i32
    %c0_i32_1 = arith.constant 0 : i32
    return %c0_i32, %c0_i32_0 : i32, i32
  }
  func.func @transform_5(%arg0: i32) -> (i32, i32) {
    %c0_i32 = arith.constant 0 : i32
    %c0_i32_0 = arith.constant 0 : i32
    %c0_i32_1 = arith.constant 0 : i32
    return %c0_i32, %c0_i32_0 : i32, i32
  }
  func.func @transform_6(%arg0: i32) -> (i32, i32, i32) {
    %c0_i32 = arith.constant 0 : i32
    %c0_i32_0 = arith.constant 0 : i32
    %c0_i32_1 = arith.constant 0 : i32
    return %arg0, %c0_i32, %c0_i32_0 : i32, i32, i32
  }
}

</mosaic_0001>

<bundles_post_ra>
// kernel: tpu_custom_call.1
= control target key start
LH: loop header
LB: loop body
LE: loop exit
PB: predicated region body
PF: predicated region fallthrough
CT: control target
= control target key end

     0   :  { %s2370_s0 = inlined_call_operand.<no memory space> [shape: f32[1], index: 0, kind: input, shape index: {}]   ;;  %s2371_s1 = inlined_call_operand.hbm [shape: bf16[2,256,128], index: 1, kind: input, shape index: {}]   ;;  %s2372_s2 = inlined_call_operand.hbm [shape: bf16[128,128], index: 2, kind: input, shape index: {}]   ;;  %s2373_s3 = inlined_call_operand.vmem [shape: f32[1,128], index: 3, kind: input, shape index: {}]   ;;  %s2374_s4 = inlined_call_operand.hbm [shape: bf16[128,128], index: 4, kind: input, shape index: {}]   ;;  %s2375_s5 = inlined_call_operand.vmem [shape: f32[1,128], index: 5, kind: input, shape index: {}]   ;;  %s2376_s6 = inlined_call_operand.hbm [shape: f32[2,1,128], index: 6, kind: output, shape index: {}]  }
   0x1   :  { %11 = sst [smem:[#allocation2]] %s2370_s0 }
   0x2   :  { %12 = vsyncpa [#allocation4], 0 }
   0x3   :  { %14 = vsyncpa [#allocation4 + $0x1], 0 }
   0x4   :  { %15 = vsyncpa [#allocation7], 0 }
   0x5   :  { %16 = vsyncpa [#allocation5], 0 }
   0x6   :  { %18 = vsyncpa [#allocation5 + $0x1], 0  ;;  %s1655_s23 = smov 0   ;;  %s1657_s24 = smov 0  }
   0x7   :  { %s1659_s25 = smov 0   ;;  %s1661_s26 = smov 0  }
   0x8 LB: > { %s1676_s0 = sadd.s32 4294967295, %s1607_s26   ;;  %s1197_s27 = sadd.s32 4294967294, %s1607_s26   ;;  %s1607_s26 = sphi %s1661_s26, %s2399_s26   ;;  %s1603_s25 = sphi %s1659_s25, %s2398_s25   ;;  %s1599_s24 = sphi %s1657_s24, %s2397_s24   ;;  %s1595_s23 = sphi %s1655_s23, %s2396_s23  }
   0x9   : > { %p65_p0 = scmp.ne.s32.totalorder %s1599_s24, %s1595_s23  ;;  %p2377_p1 = scmp.eq.s32.totalorder %s1676_s0, 0 }
   0xa   : > { %p173_p2 = scmp.eq.s32.totalorder %s1676_s0, 1  ;;  %p179_p3 = scmp.eq.s32.totalorder %s1197_s27, 1 }
   0xb   : > { %p1685_p4 = por %p2377_p1, %p65_p0  ;;  %p1198_p5 = scmp.ge.s32.totalorder %s1607_s26, 1 }
   0xc   : > { %p1690_p6 = por %p179_p3, %p65_p0  ;;  %p186_p7 = scmp.lt.s32.totalorder %s1607_s26, 3 }
   0xd   : > { %s2382_s28 = scalar_select %p1685_p4, 1, 0 }
   0xe   : > { %s2383_s29 = scalar_select %p1690_p6, 1, 0 }
   0xf   : > { %p1695_p8 = pnand %p1198_p5, %p186_p7  ;;  %s1609_s7 = smov [#allocation6]  }
  0x10   : > { %s201_s8 = sshll.u32 %s1609_s7, 4  ;;  %s1610_s10 = smov [#allocation8]   ;;  %s202_s8 = int_to_ptr.vmem [resolvable:$true] %s201_s8 }
  0x11   : > { %s2384_s30 = scalar_select %p1695_p8, 1, 0 }
  0x12   : > { %p1364_p9 = pneg %p1695_p8  ;;  %s217_s11 = sshll.u32 %s1610_s10, 4  ;;  %s218_s11 = int_to_ptr.vmem [resolvable:$true] %s217_s11 }
  0x13   : > { %s1470_s12 = scalar_lea.vmem %s202_s8, 1024  ;;  %p1478_p5 = scmp.lt.s32.totalorder %s202_s8, %s202_s8 }
  0x14   : > { %p1704_p11 = pnand %p1364_p9, %p2377_p1  ;;  %p1471_p13 = scmp.ne.s32.totalorder %s202_s8, %s1470_s12 }
  0x15   : > { %p1479_p7 = scmp.lt.s32.totalorder %s1470_s12, %s1470_s12 }
  0x16   : > { %p1461_p12 = pneg %p1704_p11 }
  0x17   : > { %p1480_p10 = por %p1479_p7, %p1478_p5 }
  0x18   : > { %p1473_p0 = pnand %p1471_p13, %p1461_p12 }
  0x1a   : > { %p1474_p3 = pneg %p1473_p0 }
  0x1c   : > { %p1481_p9 = pnand %p1480_p10, %p1474_p3 }
  0x1e   : > { %1484 = shalt.err (!%p1481_p9)
}
  0x1f   : > { %s2378_s13 = smov 64   ;;  %s1612_s14 = smov 4  }
  0x20   : > { %1367 = dma.hbm_to_vmem [thread:$0]  (!%p1704_p11), %s2372_s2, 1024, %s202_s8, [#allocation7], %s2378_s13, %s2378_s13, %s1612_s14  }
  0x21   : > { %s1496_s17 = scalar_lea.vmem %s218_s11, 1024  ;;  %p1504_p10 = scmp.lt.s32.totalorder %s218_s11, %s218_s11 }
  0x22   : > { %p1497_p13 = scmp.ne.s32.totalorder %s218_s11, %s1496_s17  ;;  %p1505_p3 = scmp.lt.s32.totalorder %s1496_s17, %s1496_s17 }
  0x24   : > { %p1499_p0 = pnand %p1497_p13, %p1461_p12  ;;  %p1506_p7 = por %p1505_p3, %p1504_p10 }
  0x26   : > { %p1500_p5 = pneg %p1499_p0 }
  0x28   : > { %p1507_p9 = pnand %p1506_p7, %p1500_p5 }
  0x2a   : > { %1510 = shalt.err (!%p1507_p9)
}
  0x2b   : > { %1370 = dma.hbm_to_vmem [thread:$0]  (!%p1704_p11), %s2374_s4, 1024, %s218_s11, [#allocation7], %s2378_s13, %s2378_s13, %s1612_s14  }
  0x2c   : > { %s1733_s20 = sadd.s32 1, %s1607_s26   ;;  %s52_s21 = sadd.s32 1, %s1603_s25 }
  0x2d   : > { %s49_s22 = ssub.s32 %s1607_s26, %s1733_s20  ;;  %p59_p12 = scmp.ne.s32.totalorder %s1603_s25, %s1599_s24 }
  0x2e   : > { %p50_p13 = scmp.eq.s32.totalorder %s49_s22, 0  ;;  %p60_p0 = scmp.eq.s32.totalorder %s1607_s26, 0 }
  0x2f   : > { %p1743_p5 = por %p173_p2, %p59_p12  ;;  %p1381_p10 = scmp.lt.s32.totalorder %s1607_s26, 2 }
  0x30   : > { %s1749_s7 = scalar_select %p50_p13, %s1603_s25, %s52_s21  }
  0x31   : > { %s2386_s27 = scalar_select %p1743_p5, 1, 0 }
  0x32   : > { %p61_p3 = por %p60_p0, %p59_p12  ;;  %s234_s8 = sand.u32 1, %s1603_s25  }
  0x33   : > { %s1202_s9 = sshll.u32 %s234_s8, 7  ;;  %s1250_s10 = sshll.u32 %s1607_s26, 11 }
  0x34   : > { %s1756_s15 = scalar_lea.hbm %s2371_s1, %s1250_s10  ;;  %s238_s16 = scalar_lea.vmem [#allocation3], %s1202_s9 }
  0x35   : > { %s245_s17 = sshll.u32 %s238_s16, 4  ;;  %p1760_p2 = pnand %p1381_p10, %p61_p3  ;;  %s1758_s17 = int_to_ptr.vmem [resolvable:$true] %s245_s17 }
  0x36   : > { %s1764_s19 = scalar_lea.sflag [#allocation4], %s234_s8  ;;  %s1511_s21 = scalar_lea.hbm %s1756_s15, 2048 }
  0x37   : > { %p1512_p11 = scmp.ne.s32.totalorder %s1756_s15, %s1511_s21  ;;  %p1513_p7 = pneg %p1760_p2 }
  0x38   : > { %s1516_s9 = scalar_lea.hbm %s2371_s1, 4096  ;;  %p1517_p13 = scmp.lt.s32.totalorder %s1756_s15, %s2371_s1 }
  0x39   : > { %p1514_p9 = pnand %p1513_p7, %p1512_p11  ;;  %p1518_p0 = scmp.lt.s32.totalorder %s1516_s9, %s1511_s21 }
  0x3b   : > { %p1515_p12 = pneg %p1514_p9  ;;  %p1519_p10 = por %p1518_p0, %p1517_p13 }
  0x3d   : > { %p1520_p3 = pnand %p1519_p10, %p1515_p12 }
  0x3f   : > { %1523 = shalt.err (!%p1520_p3)
}
  0x40   : > { %s1524_s8 = scalar_lea.vmem %s1758_s17, 2048  ;;  %s1613_s16 = smov [#allocation3]  }
  0x41   : > { %p1525_p1 = scmp.ne.s32.totalorder %s1758_s17, %s1524_s8  ;;  %s1529_s13 = sshll.u32 %s1613_s16, 4  ;;  %s1530_s13 = int_to_ptr.vmem [resolvable:$false] %s1529_s13 }
  0x42   : > { %s1531_s22 = scalar_lea.vmem %s1530_s13, 4096  ;;  %p1532_p9 = scmp.lt.s32.totalorder %s1758_s17, %s1530_s13 }
  0x43   : > { %p1527_p6 = pnand %p1525_p1, %p1513_p7  ;;  %p1533_p5 = scmp.lt.s32.totalorder %s1531_s22, %s1524_s8 }
  0x45   : > { %p1528_p11 = pneg %p1527_p6  ;;  %p1534_p4 = por %p1533_p5, %p1532_p9 }
  0x47   : > { %p1535_p8 = pnand %p1534_p4, %p1528_p11 }
  0x49   : > { %1538 = shalt.err (!%p1535_p8)
}
  0x4a   : > { %s2388_s21 = smov 64   ;;  %p2389_p1 = scmp.ne.s32.totalorder %s2384_s30, 0 }
  0x4b   : > { %1374 = dma.hbm_to_vmem [thread:$0]  (!%p1760_p2), %s1756_s15, 2048, %s1758_s17, %s1764_s19, %s2388_s21, %s2388_s21, %s1612_s14  }
  0x4c   : > { %257 = sbr.rel (%p2389_p1) target bundleno = 738 (0x2e2), region = 44  ;;  %s1791_s10 = sand.u32 (!%p2389_p1), 1, %s1599_s24  }
  0x4d   : > { %s1206_s13 = sshll.u32 (!%p2389_p1), %s1791_s10, 7  ;;  %s260_s9 = scalar_lea.sflag (!%p2389_p1), [#allocation4], %s1791_s10 }
  0x4e   : > { %s1795_s11 = scalar_lea.vmem (!%p2389_p1), [#allocation3], %s1206_s13  ;;  %p2390_p4 = scmp.ne.s32.totalorder (!%p2389_p1), %s2382_s28, 0 }
  0x51   : > { %1582 = dma.done.wait (%p2390_p4), %s260_s9, 2048  }
  0x52   : > { %1584 = vsyncadd (%p2390_p4), %s260_s9, 4294965248  ;;  %p2391_p6 = scmp.eq.s32.totalorder %s1676_s0, 0 }
  0x54   : > { %1586 = dma.done.wait (%p2391_p6), [#allocation7], 2048   ;;  %p2392_p8 = pmov %p2391_p6 }
  0x55   : > { %v1423_v0 = vld [vmem:[#allocation6 + $0x38] sm:$0xff]   ;;  %v1424_v1 = vld [vmem:[#allocation6 + $0x30] sm:$0xff]   ;;  %v1425_v2 = vld [vmem:[#allocation6 + $0x28] sm:$0xff]   ;;  %v1614_v24 = vmov 0.0   ;;  %vm1615_vm0 = vmmov 0   ;;  %s692_s14 = sld [smem:[#allocation2]] }
  0x56   : > { %1588 = vsyncadd (%p2392_p8), [#allocation7], 4294965248  ;;  %1284 = vmatprep.subr.bf16.mxu0 %v1423_v0  ;;  %v1426_v3 = vld [vmem:[#allocation6 + $0x20] sm:$0xff]   ;;  %v1427_v5 = vld [vmem:[#allocation6 + $0x18] sm:$0xff]   ;;  %1332 = vmatprep.subr.bf16.mxu1 %v1614_v24  ;;  %s1247_s18 = sshll.u32 %s1676_s0, 4  ;;  %s298_s19 = scalar_lea.vmem [#allocation9], %s1791_s10 }
  0x57   : > { %1285 = vmatpush3.bf16.msra.mxu0 %v1423_v0  ;;  %v1431_v4 = vld [vmem:[%s1795_s11] sm:$0xff]   ;;  %v1428_v6 = vld [vmem:[#allocation6 + $0x10] sm:$0xff]   ;;  %v1429_v7 = vld [vmem:[#allocation6 + $0x8] sm:$0xff]   ;;  %1348 = vmatprep.mubr.msk.bf16.mxu1 %vm1615_vm0, %v1614_v24  ;;  %s1112_s12 = sshll.u32 %s298_s19, 4  ;;  %s2327_s22 = scalar_lea.hbm %s2376_s6, %s1247_s18  ;;  %s2329_s12 = int_to_ptr.vmem [resolvable:$true] %s1112_s12 }
  0x58   : > { %1286 = vmatprep.subr.bf16.mxu0 %v1424_v1  ;;  %1300 = vmatprep.mubr.bf16.mxu0 %v1431_v4  ;;  %v1430_v8 = vld [vmem:[#allocation6] sm:$0xff]   ;;  %v1432_v9 = vld [vmem:[%s1795_s11 + $0x8] sm:$0xff]   ;;  %v1433_v10 = vld [vmem:[%s1795_s11 + $0x10] sm:$0xff]   ;;  %s1100_s21 = scalar_lea.sflag [#allocation5], %s1791_s10  ;;  %s1539_s13 = scalar_lea.vmem %s2329_s12, 16 }
  0x59   : > { %v1434_v11 = vld [vmem:[%s1795_s11 + $0x18] sm:$0xff]   ;;  %v1435_v12 = vld [vmem:[%s1795_s11 + $0x20] sm:$0xff]   ;;  %v1436_v13 = vld [vmem:[%s1795_s11 + $0x28] sm:$0xff]   ;;  %p1540_p5 = scmp.ne.s32.totalorder %s2329_s12, %s1539_s13  ;;  %p2393_p2 = scmp.ne.s32.totalorder %s2386_s27, 0 }
  0x5a   : > { %v1437_v14 = vld [vmem:[%s1795_s11 + $0x30] sm:$0xff]   ;;  %v1438_v15 = vld [vmem:[%s1795_s11 + $0x38] sm:$0xff]   ;;  %v1439_v16 = vld [vmem:[%s1795_s11 + $0x40] sm:$0xff]   ;;  %s1616_s0 = smov [#allocation9]  }
  0x5b   : > { %1287 = vmatpush3.bf16.msra.mxu0 %v1424_v1  ;;  %v1440_v17 = vld [vmem:[%s1795_s11 + $0x48] sm:$0xff]   ;;  %v1441_v18 = vld [vmem:[%s1795_s11 + $0x50] sm:$0xff]   ;;  %v1442_v19 = vld [vmem:[%s1795_s11 + $0x58] sm:$0xff]   ;;  %p1541_p7 = pnand %p1540_p5, %p2393_p2  ;;  %s1543_s9 = sshll.u32 %s1616_s0, 4  ;;  %s1544_s9 = int_to_ptr.vmem [resolvable:$false] %s1543_s9 }
  0x5c   : > { %1288 = vmatprep.subr.bf16.mxu0 %v1425_v2  ;;  %v1443_v20 = vld [vmem:[%s1795_s11 + $0x60] sm:$0xff]   ;;  %v1444_v21 = vld [vmem:[%s1795_s11 + $0x68] sm:$0xff]   ;;  %v1445_v22 = vld [vmem:[%s1795_s11 + $0x70] sm:$0xff]   ;;  %p1546_p13 = scmp.lt.s32.totalorder %s2329_s12, %s1544_s9 }
  0x5d   : > { %v1446_v23 = vld [vmem:[%s1795_s11 + $0x78] sm:$0xff]   ;;  %v1825_v26 = vld [vmem:[%s2373_s3] ss:$0 sm:$0xff]  ;;  %p1542_p12 = pneg %p1541_p7  ;;  %s1545_s11 = scalar_lea.vmem %s1544_s9, 32 }
  0x5e   : > { %p1547_p0 = scmp.lt.s32.totalorder %s1545_s11, %s1539_s13 }
  0x5f   : > { %1289 = vmatpush3.bf16.msra.mxu0 %v1425_v2 }
  0x60   : > { %1290 = vmatprep.subr.bf16.mxu0 %v1426_v3  ;;  %p1548_p10 = por %p1547_p0, %p1546_p13 }
  0x62   : > { %p1549_p3 = pnand %p1548_p10, %p1542_p12 }
  0x63   : > { %1291 = vmatpush3.bf16.msra.mxu0 %v1426_v3 }
  0x64   : > { %1292 = vmatprep.subr.bf16.mxu0 %v1427_v5 }
  0x67   : > { %1293 = vmatpush3.bf16.msra.mxu0 %v1427_v5 }
  0x68   : > { %1294 = vmatprep.subr.bf16.mxu0 %v1428_v6 }
  0x6b   : > { %1295 = vmatpush3.bf16.msra.mxu0 %v1428_v6 }
  0x6c   : > { %1296 = vmatprep.subr.bf16.mxu0 %v1429_v7 }
  0x6f   : > { %1297 = vmatpush3.bf16.msra.mxu0 %v1429_v7 }
  0x70   : > { %1298 = vmatprep.subr.bf16.mxu0 %v1430_v8 }
  0x73   : > { %1299 = vmatpush3.bf16.msra.mxu0 %v1430_v8 }
  0x76   : > { %1301 = vmatmul.mubr.bf16.vlgmr.msra.gmra.mxu0 %v1432_v9 }
  0x77   : > { %1304 = vmatprep.mubr.bf16.mxu0 %v1433_v10 }
  0x7e   : > { %1305 = vmatmul.mubr.bf16.gmra.mxu0 %v1434_v11 }
  0x7f   : > { %1308 = vmatprep.mubr.bf16.mxu0 %v1435_v12 }
  0x86   : > { %1309 = vmatmul.mubr.bf16.gmra.mxu0 %v1436_v13 }
  0x87   : > { %1312 = vmatprep.mubr.bf16.mxu0 %v1437_v14 }
  0x8e   : > { %1313 = vmatmul.mubr.bf16.gmra.mxu0 %v1438_v15 }
  0x8f   : > { %1316 = vmatprep.mubr.bf16.mxu0 %v1439_v16 }
  0x96   : > { %1317 = vmatmul.mubr.bf16.gmra.mxu0 %v1440_v17 }
  0x97   : > { %1320 = vmatprep.mubr.bf16.mxu0 %v1441_v18 }
  0x9e   : > { %1321 = vmatmul.mubr.bf16.gmra.mxu0 %v1442_v19 }
  0x9f   : > { %1324 = vmatprep.mubr.bf16.mxu0 %v1443_v20 }
  0xa6   : > { %1325 = vmatmul.mubr.bf16.gmra.mxu0 %v1444_v21 }
  0xa7   : > { %1328 = vmatprep.mubr.bf16.mxu0 %v1445_v22 }
  0xae   : > { %1329 = vmatmul.mubr.bf16.gmra.mxu0 %v1446_v23 }
 0x136   : > { %v1302_v25 = vpop.f32.mrf.mxu0 }
 0x137   : > { %v542_v30 = vadd.f32 %v1302_v25, %v1825_v26 }
 0x138   : > { %v533_v27 = vpop.f32.mrf.mxu0 }
 0x139   : > { %v534_v28 = vadd.f32 %v1825_v26, %v533_v27  ;;  %v1833_v36 = vmax.f32 %v542_v30, 0.0 }
 0x13a   : > { %v1303_v29 = vpop.f32.mrf.mxu0 }
 0x13b   : > { %v545_v31 = vadd.f32 %v1303_v29, %v1825_v26  ;;  %v1830_v33 = vmax.f32 %v534_v28, 0.0  ;;  %v732_v46 = vmul.f32 %v1833_v36, %v1833_v36 }
 0x13c   : > { %v536_v32 = vpop.f32.mrf.mxu0 }
 0x13d   : > { %v537_v34 = vadd.f32 %v1825_v26, %v536_v32  ;;  %v1837_v38 = vmax.f32 %v545_v31, 0.0  ;;  %v730_v40 = vmul.f32 %v1830_v33, %v1830_v33 }
 0x13e   : > { %v1306_v35 = vpop.f32.mrf.mxu0 }
 0x13f   : > { %v1835_v37 = vmax.f32 %v537_v34, 0.0  ;;  %v558_v44 = vadd.f32 %v1306_v35, %v1825_v26  ;;  %v733_v50 = vmul.f32 %v1837_v38, %v1837_v38 }
 0x140   : > { %v549_v39 = vpop.f32.mrf.mxu0 }
 0x141   : > { %v693_v41 = vadd.f32 %v1835_v37, %v1830_v33  ;;  %v731_v42 = vmul.f32 %v1835_v37, %v1835_v37  ;;  %v550_v43 = vadd.f32 %v1825_v26, %v549_v39  ;;  %v1857_v56 = vmax.f32 %v558_v44, 0.0 }
 0x142   : > { %v1307_v45 = vpop.f32.mrf.mxu0 }
 0x143   : > { %v694_v47 = vadd.f32 %v693_v41, %v1833_v36  ;;  %v762_v48 = vadd.f32 %v731_v42, %v730_v40  ;;  %v1850_v49 = vmax.f32 %v550_v43, 0.0  ;;  %v561_v54 = vadd.f32 %v1307_v45, %v1825_v26 }
 0x144   : > { %v552_v51 = vpop.f32.mrf.mxu0  ;;  %v736_v6 = vmul.f32 %v1857_v56, %v1857_v56 }
 0x145   : > { %v763_v52 = vadd.f32 %v762_v48, %v732_v46  ;;  %v695_v53 = vadd.f32 %v694_v47, %v1837_v38  ;;  %v553_v55 = vadd.f32 %v1825_v26, %v552_v51  ;;  %v734_v59 = vmul.f32 %v1850_v49, %v1850_v49 }
 0x146   : > { %v1310_v57 = vpop.f32.mrf.mxu0  ;;  %v1864_v0 = vmax.f32 %v561_v54, 0.0 }
 0x147   : > { %v696_v58 = vadd.f32 %v695_v53, %v1850_v49  ;;  %v764_v60 = vadd.f32 %v763_v52, %v733_v50  ;;  %v1862_v61 = vmax.f32 %v553_v55, 0.0  ;;  %v574_v3 = vadd.f32 %v1310_v57, %v1825_v26 }
 0x148   : > { %v565_v62 = vpop.f32.mrf.mxu0  ;;  %v737_v12 = vmul.f32 %v1864_v0, %v1864_v0 }
 0x149   : > { %v765_v63 = vadd.f32 %v764_v60, %v734_v59  ;;  %v697_v1 = vadd.f32 %v696_v58, %v1862_v61  ;;  %v735_v2 = vmul.f32 %v1862_v61, %v1862_v61  ;;  %v566_v4 = vadd.f32 %v1825_v26, %v565_v62 }
 0x14a   : > { %v1311_v5 = vpop.f32.mrf.mxu0  ;;  %v1881_v16 = vmax.f32 %v574_v3, 0.0 }
 0x14b   : > { %v698_v7 = vadd.f32 %v697_v1, %v1857_v56  ;;  %v766_v8 = vadd.f32 %v765_v63, %v735_v2  ;;  %v1874_v9 = vmax.f32 %v566_v4, 0.0  ;;  %v577_v10 = vadd.f32 %v1311_v5, %v1825_v26 }
 0x14c   : > { %v568_v11 = vpop.f32.mrf.mxu0  ;;  %v740_v31 = vmul.f32 %v1881_v16, %v1881_v16 }
 0x14d   : > { %v767_v13 = vadd.f32 %v766_v8, %v736_v6  ;;  %v699_v14 = vadd.f32 %v698_v7, %v1864_v0  ;;  %v569_v15 = vadd.f32 %v1825_v26, %v568_v11  ;;  %v738_v19 = vmul.f32 %v1874_v9, %v1874_v9 }
 0x14e   : > { %v1314_v17 = vpop.f32.mrf.mxu0  ;;  %v1888_v22 = vmax.f32 %v577_v10, 0.0 }
 0x14f   : > { %v700_v18 = vadd.f32 %v699_v14, %v1874_v9  ;;  %v768_v20 = vadd.f32 %v767_v13, %v737_v12  ;;  %v1886_v21 = vmax.f32 %v569_v15, 0.0  ;;  %v590_v39 = vadd.f32 %v1314_v17, %v1825_v26 }
 0x150   : > { %v581_v23 = vpop.f32.mrf.mxu0  ;;  %v741_v41 = vmul.f32 %v1888_v22, %v1888_v22 }
 0x151   : > { %v769_v25 = vadd.f32 %v768_v20, %v738_v19  ;;  %v701_v27 = vadd.f32 %v700_v18, %v1886_v21  ;;  %v739_v28 = vmul.f32 %v1886_v21, %v1886_v21  ;;  %v582_v29 = vadd.f32 %v1825_v26, %v581_v23 }
 0x152   : > { %v1315_v30 = vpop.f32.mrf.mxu0  ;;  %v1908_v51 = vmax.f32 %v590_v39, 0.0 }
 0x153   : > { %v702_v32 = vadd.f32 %v701_v27, %v1881_v16  ;;  %v770_v34 = vadd.f32 %v769_v25, %v739_v28  ;;  %v1897_v35 = vmax.f32 %v582_v29, 0.0  ;;  %v593_v44 = vadd.f32 %v1315_v30, %v1825_v26 }
 0x154   : > { %v584_v40 = vpop.f32.mrf.mxu0  ;;  %v744_v63 = vmul.f32 %v1908_v51, %v1908_v51 }
 0x155   : > { %v771_v42 = vadd.f32 %v770_v34, %v740_v31  ;;  %v703_v43 = vadd.f32 %v702_v32, %v1888_v22  ;;  %v585_v45 = vadd.f32 %v1825_v26, %v584_v40  ;;  %v742_v48 = vmul.f32 %v1897_v35, %v1897_v35 }
 0x156   : > { %v1318_v46 = vpop.f32.mrf.mxu0  ;;  %v1913_v57 = vmax.f32 %v593_v44, 0.0 }
 0x157   : > { %v704_v47 = vadd.f32 %v703_v43, %v1897_v35  ;;  %v772_v50 = vadd.f32 %v771_v42, %v741_v41  ;;  %v1910_v52 = vmax.f32 %v585_v45, 0.0  ;;  %v606_v62 = vadd.f32 %v1318_v46, %v1825_v26 }
 0x158   : > { %v597_v53 = vpop.f32.mrf.mxu0  ;;  %v745_v6 = vmul.f32 %v1913_v57, %v1913_v57 }
 0x159   : > { %v773_v54 = vadd.f32 %v772_v50, %v742_v48  ;;  %v598_v55 = vadd.f32 %v1825_v26, %v597_v53  ;;  %v705_v58 = vadd.f32 %v704_v47, %v1910_v52  ;;  %v743_v59 = vmul.f32 %v1910_v52, %v1910_v52 }
 0x15a   : > { %v1319_v60 = vpop.f32.mrf.mxu0  ;;  %v1929_v12 = vmax.f32 %v606_v62, 0.0 }
 0x15b   : > { %v706_v1 = vadd.f32 %v705_v58, %v1908_v51  ;;  %v774_v2 = vadd.f32 %v773_v54, %v743_v59  ;;  %v1922_v3 = vmax.f32 %v598_v55, 0.0  ;;  %v609_v10 = vadd.f32 %v1319_v60, %v1825_v26 }
 0x15c   : > { %v600_v4 = vpop.f32.mrf.mxu0  ;;  %v748_v29 = vmul.f32 %v1929_v12, %v1929_v12 }
 0x15d   : > { %v601_v5 = vadd.f32 %v1825_v26, %v600_v4  ;;  %v775_v7 = vadd.f32 %v774_v2, %v744_v63  ;;  %v707_v8 = vadd.f32 %v706_v1, %v1913_v57  ;;  %v746_v15 = vmul.f32 %v1922_v3, %v1922_v3 }
 0x15e   : > { %v1322_v11 = vpop.f32.mrf.mxu0  ;;  %v1939_v25 = vmax.f32 %v609_v10, 0.0 }
 0x15f   : > { %v1931_v13 = vmax.f32 %v601_v5, 0.0  ;;  %v708_v14 = vadd.f32 %v707_v8, %v1922_v3  ;;  %v776_v17 = vadd.f32 %v775_v7, %v745_v6  ;;  %v622_v32 = vadd.f32 %v1322_v11, %v1825_v26 }
 0x160   : > { %v613_v18 = vpop.f32.mrf.mxu0  ;;  %v749_v41 = vmul.f32 %v1939_v25, %v1939_v25 }
 0x161   : > { %v747_v19 = vmul.f32 %v1931_v13, %v1931_v13  ;;  %v614_v20 = vadd.f32 %v1825_v26, %v613_v18  ;;  %v777_v23 = vadd.f32 %v776_v17, %v746_v15  ;;  %v709_v27 = vadd.f32 %v708_v14, %v1931_v13 }
 0x162   : > { %v1323_v28 = vpop.f32.mrf.mxu0  ;;  %v1955_v47 = vmax.f32 %v622_v32, 0.0 }
 0x163   : > { %v710_v30 = vadd.f32 %v709_v27, %v1929_v12  ;;  %v778_v31 = vadd.f32 %v777_v23, %v747_v19  ;;  %v1946_v34 = vmax.f32 %v614_v20, 0.0  ;;  %v625_v44 = vadd.f32 %v1323_v28, %v1825_v26 }
 0x164   : > { %v616_v39 = vpop.f32.mrf.mxu0  ;;  %v752_v2 = vmul.f32 %v1955_v47, %v1955_v47 }
 0x165   : > { %v617_v40 = vadd.f32 %v1825_v26, %v616_v39  ;;  %v779_v42 = vadd.f32 %v778_v31, %v748_v29  ;;  %v711_v43 = vadd.f32 %v710_v30, %v1939_v25  ;;  %v750_v50 = vmul.f32 %v1946_v34, %v1946_v34 }
 0x166   : > { %v1326_v45 = vpop.f32.mrf.mxu0  ;;  %v1963_v60 = vmax.f32 %v625_v44, 0.0 }
 0x167   : > { %v1953_v46 = vmax.f32 %v617_v40, 0.0  ;;  %v712_v48 = vadd.f32 %v711_v43, %v1946_v34  ;;  %v780_v53 = vadd.f32 %v779_v42, %v749_v41  ;;  %v638_v1 = vadd.f32 %v1326_v45, %v1825_v26 }
 0x168   : > { %v629_v54 = vpop.f32.mrf.mxu0  ;;  %v753_v10 = vmul.f32 %v1963_v60, %v1963_v60 }
 0x169   : > { %v751_v55 = vmul.f32 %v1953_v46, %v1953_v46  ;;  %v630_v58 = vadd.f32 %v1825_v26, %v629_v54  ;;  %v781_v59 = vadd.f32 %v780_v53, %v750_v50  ;;  %v713_v62 = vadd.f32 %v712_v48, %v1953_v46 }
 0x16a   : > { %v1327_v63 = vpop.f32.mrf.mxu0  ;;  %v1977_v18 = vmax.f32 %v638_v1, 0.0 }
 0x16b   : > { %v714_v4 = vadd.f32 %v713_v62, %v1955_v47  ;;  %v782_v5 = vadd.f32 %v781_v59, %v751_v55  ;;  %v1970_v6 = vmax.f32 %v630_v58, 0.0  ;;  %v641_v15 = vadd.f32 %v1327_v63, %v1825_v26 }
 0x16c   : > { %v632_v7 = vpop.f32.mrf.mxu0  ;;  %v756_v41 = vmul.f32 %v1977_v18, %v1977_v18 }
 0x16d   : > { %v633_v8 = vadd.f32 %v1825_v26, %v632_v7  ;;  %v783_v11 = vadd.f32 %v782_v5, %v752_v2  ;;  %v715_v14 = vadd.f32 %v714_v4, %v1963_v60  ;;  %v754_v23 = vmul.f32 %v1970_v6, %v1970_v6 }
 0x16e   : > { %v1330_v17 = vpop.f32.mrf.mxu0  ;;  %v1987_v32 = vmax.f32 %v641_v15, 0.0 }
 0x16f   : > { %v1979_v19 = vmax.f32 %v633_v8, 0.0  ;;  %v716_v20 = vadd.f32 %v715_v14, %v1970_v6  ;;  %v784_v27 = vadd.f32 %v783_v11, %v753_v10  ;;  %v654_v44 = vadd.f32 %v1330_v17, %v1825_v26 }
 0x170   : > { %v645_v28 = vpop.f32.mrf.mxu0  ;;  %v757_v53 = vmul.f32 %v1987_v32, %v1987_v32 }
 0x171   : > { %v755_v29 = vmul.f32 %v1979_v19, %v1979_v19  ;;  %v646_v30 = vadd.f32 %v1825_v26, %v645_v28  ;;  %v785_v31 = vadd.f32 %v784_v27, %v754_v23  ;;  %v717_v39 = vadd.f32 %v716_v20, %v1979_v19  ;;  %v1447_v27 = vld [vmem:[#allocation8 + $0x38] sm:$0xff]  }
 0x172   : > { %v1331_v40 = vpop.f32.mrf.mxu0  ;;  %v2003_v62 = vmax.f32 %v654_v44, 0.0  ;;  %1333 = vmatpush3.bf16.msra.mxu1 %v1447_v27 }
 0x173   : > { %v718_v42 = vadd.f32 %v717_v39, %v1977_v18  ;;  %v786_v43 = vadd.f32 %v785_v31, %v755_v29  ;;  %v1994_v45 = vmax.f32 %v646_v30, 0.0  ;;  %v657_v58 = vadd.f32 %v1331_v40, %v1825_v26  ;;  %v1448_v30 = vld [vmem:[#allocation8 + $0x30] sm:$0xff]   ;;  %1334 = vmatprep.subr.bf16.mxu1 %v1614_v24 }
 0x174   : > { %v648_v48 = vpop.f32.mrf.mxu0 }
 0x175   : > { %v649_v50 = vadd.f32 %v1825_v26, %v648_v48  ;;  %v787_v54 = vadd.f32 %v786_v43, %v756_v41  ;;  %v719_v55 = vadd.f32 %v718_v42, %v1987_v32  ;;  %v758_v1 = vmul.f32 %v1994_v45, %v1994_v45  ;;  %v1449_v42 = vld [vmem:[#allocation8 + $0x28] sm:$0xff]  }
 0x176   : > { %v2010_v7 = vmax.f32 %v657_v58, 0.0  ;;  %v760_v26 = vmul.f32 %v2003_v62, %v2003_v62  ;;  %1335 = vmatpush3.bf16.msra.mxu1 %v1448_v30  ;;  %v1451_v58 = vld [vmem:[#allocation8 + $0x18] sm:$0xff]  }
 0x177   : > { %v2001_v59 = vmax.f32 %v649_v50, 0.0  ;;  %v720_v63 = vadd.f32 %v719_v55, %v1994_v45  ;;  %v788_v2 = vadd.f32 %v787_v54, %v757_v53  ;;  %1336 = vmatprep.subr.bf16.mxu1 %v1614_v24  ;;  %v1450_v50 = vld [vmem:[#allocation8 + $0x20] sm:$0xff]  }
 0x178   : > { %v761_v14 = vmul.f32 %v2010_v7, %v2010_v7 }
 0x179   : > { %v759_v4 = vmul.f32 %v2001_v59, %v2001_v59  ;;  %v789_v5 = vadd.f32 %v788_v2, %v758_v1  ;;  %v721_v8 = vadd.f32 %v720_v63, %v2001_v59 }
 0x17a   : > { %1337 = vmatpush3.bf16.msra.mxu1 %v1449_v42 }
 0x17b   : > { %v722_v10 = vadd.f32 %v721_v8, %v2003_v62  ;;  %v790_v11 = vadd.f32 %v789_v5, %v759_v4  ;;  %1338 = vmatprep.subr.bf16.mxu1 %v1614_v24  ;;  %v1452_v4 = vld [vmem:[#allocation8 + $0x10] sm:$0xff]  }
 0x17d   : > { %v723_v15 = vadd.f32 %v722_v10, %v2010_v7  ;;  %v791_v17 = vadd.f32 %v790_v11, %v760_v26  ;;  %v1453_v26 = vld [vmem:[#allocation8 + $0x8] sm:$0xff]   ;;  %v1454_v10 = vld [vmem:[#allocation8] sm:$0xff]  }
 0x17e   : > { %1339 = vmatpush3.bf16.msra.mxu1 %v1450_v50 }
 0x17f   : > { %v724_v20 = vrot.slane %v723_v15, 4  ;;  %v792_v23 = vadd.f32 %v791_v17, %v761_v14  ;;  %1340 = vmatprep.subr.bf16.mxu1 %v1614_v24 }
 0x181   : > { %v725_v28 = vadd.f32 %v724_v20, %v723_v15  ;;  %v793_v29 = vrot.slane %v792_v23, 4 }
 0x182   : > { %1341 = vmatpush3.bf16.msra.mxu1 %v1451_v58 }
 0x183   : > { %v726_v31 = vrot.slane %v725_v28, 2  ;;  %v794_v39 = vadd.f32 %v793_v29, %v792_v23  ;;  %1342 = vmatprep.subr.bf16.mxu1 %v1614_v24  ;;  %v812_v23 = vstv %s692_s14 }
 0x185   : > { %v727_v40 = vadd.f32 %v726_v31, %v725_v28  ;;  %v795_v41 = vrot.slane %v794_v39, 2 }
 0x186   : > { %1343 = vmatpush3.bf16.msra.mxu1 %v1452_v4 }
 0x187   : > { %v728_v43 = vrot.slane %v727_v40, 1  ;;  %v796_v44 = vadd.f32 %v795_v41, %v794_v39  ;;  %1344 = vmatprep.subr.bf16.mxu1 %v1614_v24 }
 0x189   : > { %v729_v48 = vadd.f32 %v728_v43, %v727_v40  ;;  %v797_v53 = vrot.slane %v796_v44, 1 }
 0x18a   : > { %1345 = vmatpush3.bf16.msra.mxu1 %v1453_v26 }
 0x18b   : > { %v799_v54 = vmul.f32 0.00390625, %v729_v48  ;;  %v798_v63 = vadd.f32 %v797_v53, %v796_v44  ;;  %1346 = vmatprep.subr.bf16.mxu1 %v1614_v24 }
 0x18d   : > { %v800_v55 = vmul.f32 256.0, %v799_v54 }
 0x18e   : > { %1347 = vmatpush3.bf16.msra.mxu1 %v1454_v10 }
 0x18f   : > { %v801_v1 = vmul.f32 %v800_v55, %v799_v54 }
 0x191   : > { %v802_v2 = vsub.f32 %v798_v63, %v801_v1 }
 0x193   : > { %v803_v5 = vmul.f32 0.003921569, %v802_v2 }
 0x195   : > { %v804_v8 = vmax.f32 %v803_v5, 0.0 }
 0x197   : > { %1455 = vrsqrt.f32 %v804_v8  ;;  %vm807_vm1 = vcmp.eq.f32.partialorder %v804_v8, inf  ;;  %v810_v17 = vand.u32 2147483648, %v804_v8  ;;  %vm809_vm2 = vcmp.eq.f32.partialorder %v804_v8, 0.0 }
 0x1a4   : > { %v1456_v11 = vpop.eup %1455 }
 0x1a5   : > { %v806_v14 = vmul.f32 %v1456_v11, %v804_v8 }
 0x1a7   : > { %v808_v15 = vsel %vm807_vm1, %v804_v8, %v806_v14 }
 0x1a8   : > { %v811_v20 = vsel %vm809_vm2, %v810_v17, %v808_v15 }
 0x1a9   : > { %v813_v27 = vmul.f32 %v812_v23, %v811_v20 }
 0x1ab   : > { %v2027_v28 = vadd.f32 %v813_v27, %v799_v54 }
 0x1ad   : > { %vm815_vm3 = vcmp.ge.f32.partialorder %v1830_v33, %v2027_v28  ;;  %vm816_vm4 = vcmp.ge.f32.partialorder %v1835_v37, %v2027_v28  ;;  %vm817_vm5 = vcmp.ge.f32.partialorder %v1833_v36, %v2027_v28  ;;  %vm818_vm6 = vcmp.ge.f32.partialorder %v1837_v38, %v2027_v28 }
 0x1ae   : > { %v847_v29 = vsel %vm815_vm3, %v1830_v33, 0.0  ;;  %v848_v30 = vsel %vm816_vm4, %v1835_v37, 0.0  ;;  %v849_v39 = vsel %vm817_vm5, %v1833_v36, 0.0  ;;  %vm819_vm7 = vcmp.ge.f32.partialorder %v1850_v49, %v2027_v28 }
 0x1af   : > { %v879_v31 = vadd.f32 %v848_v30, %v847_v29  ;;  %v850_v41 = vsel %vm818_vm6, %v1837_v38, 0.0  ;;  %vm820_vm8 = vcmp.ge.f32.partialorder %v1862_v61, %v2027_v28  ;;  %v851_v43 = vsel %vm819_vm7, %v1850_v49, 0.0 }
 0x1b0   : > { %vm821_vm9 = vcmp.ge.f32.partialorder %v1857_v56, %v2027_v28  ;;  %v916_v48 = vsel %vm815_vm3, 1.0, %v1614_v24  ;;  %v917_v50 = vsel %vm816_vm4, 1.0, %v1614_v24  ;;  %v852_v53 = vsel %vm820_vm8, %v1862_v61, 0.0 }
 0x1b1   : > { %v880_v40 = vadd.f32 %v879_v31, %v849_v39  ;;  %vm822_vm10 = vcmp.ge.f32.partialorder %v1864_v0, %v2027_v28  ;;  %v853_v33 = vsel %vm821_vm9, %v1857_v56, 0.0  ;;  %v948_v55 = vadd.f32 %v917_v50, %v916_v48 }
 0x1b2   : > { %vm823_vm11 = vcmp.ge.f32.partialorder %v1874_v9, %v2027_v28  ;;  %v918_v58 = vsel %vm817_vm5, 1.0, %v1614_v24  ;;  %v854_v63 = vsel %vm822_vm10, %v1864_v0, 0.0  ;;  %vm824_vm12 = vcmp.ge.f32.partialorder %v1886_v21, %v2027_v28 }
 0x1b3   : > { %v881_v42 = vadd.f32 %v880_v40, %v850_v41  ;;  %v949_v1 = vadd.f32 %v948_v55, %v918_v58  ;;  %v919_v4 = vsel %vm818_vm6, 1.0, %v1614_v24  ;;  %v855_v36 = vsel %vm823_vm11, %v1874_v9, 0.0 }
 0x1b4   : > { %vm825_vm13 = vcmp.ge.f32.partialorder %v1881_v16, %v2027_v28  ;;  %v920_v26 = vsel %vm819_vm7, 1.0, %v1614_v24  ;;  %v856_v38 = vsel %vm824_vm12, %v1886_v21, 0.0  ;;  %vm826_vm14 = vcmp.ge.f32.partialorder %v1888_v22, %v2027_v28 }
 0x1b5   : > { %v882_v44 = vadd.f32 %v881_v42, %v851_v43  ;;  %v950_v5 = vadd.f32 %v949_v1, %v919_v4  ;;  %v921_v14 = vsel %vm820_vm8, 1.0, %v1614_v24  ;;  %v857_v49 = vsel %vm825_vm13, %v1881_v16, 0.0 }
 0x1b6   : > { %vm827_vm15 = vcmp.ge.f32.partialorder %v1897_v35, %v2027_v28  ;;  %v922_v20 = vsel %vm821_vm9, 1.0, %v1614_v24  ;;  %v858_v61 = vsel %vm826_vm14, %v1888_v22, 0.0  ;;  %vm828_vm0 = vcmp.ge.f32.partialorder %v1910_v52, %v2027_v28 }
 0x1b7   : > { %v883_v54 = vadd.f32 %v882_v44, %v852_v53  ;;  %v951_v10 = vadd.f32 %v950_v5, %v920_v26  ;;  %v923_v29 = vsel %vm822_vm10, 1.0, %v1614_v24  ;;  %v859_v56 = vsel %vm827_vm15, %v1897_v35, 0.0 }
 0x1b8   : > { %vm829_vm1 = vcmp.ge.f32.partialorder %v1908_v51, %v2027_v28  ;;  %v924_v39 = vsel %vm823_vm11, 1.0, %v1614_v24  ;;  %v860_v0 = vsel %vm828_vm0, %v1910_v52, 0.0  ;;  %vm830_vm2 = vcmp.ge.f32.partialorder %v1913_v57, %v2027_v28 }
 0x1b9   : > { %v884_v37 = vadd.f32 %v883_v54, %v853_v33  ;;  %v952_v15 = vadd.f32 %v951_v10, %v921_v14  ;;  %v925_v42 = vsel %vm824_vm12, 1.0, %v1614_v24  ;;  %v861_v9 = vsel %vm829_vm1, %v1908_v51, 0.0 }
 0x1ba   : > { %vm831_vm3 = vcmp.ge.f32.partialorder %v1922_v3, %v2027_v28  ;;  %v926_v48 = vsel %vm825_vm13, 1.0, %v1614_v24  ;;  %v862_v21 = vsel %vm830_vm2, %v1913_v57, 0.0  ;;  %vm832_vm4 = vcmp.ge.f32.partialorder %v1931_v13, %v2027_v28 }
 0x1bb   : > { %v885_v2 = vadd.f32 %v884_v37, %v854_v63  ;;  %v953_v23 = vadd.f32 %v952_v15, %v922_v20  ;;  %v927_v54 = vsel %vm826_vm14, 1.0, %v1614_v24  ;;  %v863_v16 = vsel %vm831_vm3, %v1922_v3, 0.0 }
 0x1bc   : > { %vm833_vm5 = vcmp.ge.f32.partialorder %v1929_v12, %v2027_v28  ;;  %v928_v37 = vsel %vm827_vm15, 1.0, %v1614_v24  ;;  %v864_v22 = vsel %vm832_vm4, %v1931_v13, 0.0  ;;  %vm834_vm6 = vcmp.ge.f32.partialorder %v1939_v25, %v2027_v28 }
 0x1bd   : > { %v886_v8 = vadd.f32 %v885_v2, %v855_v36  ;;  %v954_v30 = vadd.f32 %v953_v23, %v923_v29  ;;  %v929_v1 = vsel %vm828_vm0, 1.0, %v1614_v24  ;;  %v865_v35 = vsel %vm833_vm5, %v1929_v12, 0.0 }
 0x1be   : > { %vm835_vm7 = vcmp.ge.f32.partialorder %v1946_v34, %v2027_v28  ;;  %v930_v36 = vsel %vm829_vm1, 1.0, %v1614_v24  ;;  %v866_v52 = vsel %vm834_vm6, %v1939_v25, 0.0  ;;  %vm836_vm8 = vcmp.ge.f32.partialorder %v1953_v46, %v2027_v28 }
 0x1bf   : > { %v887_v11 = vadd.f32 %v886_v8, %v856_v38  ;;  %v955_v40 = vadd.f32 %v954_v30, %v924_v39  ;;  %v931_v26 = vsel %vm830_vm2, 1.0, %v1614_v24  ;;  %v867_v51 = vsel %vm835_vm7, %v1946_v34, 0.0 }
 0x1c0   : > { %vm837_vm9 = vcmp.ge.f32.partialorder %v1955_v47, %v2027_v28  ;;  %v868_v57 = vsel %vm836_vm8, %v1953_v46, 0.0  ;;  %vm838_vm10 = vcmp.ge.f32.partialorder %v1963_v60, %v2027_v28  ;;  %v933_v15 = vsel %vm832_vm4, 1.0, %v1614_v24 }
 0x1c1   : > { %v888_v17 = vadd.f32 %v887_v11, %v857_v49  ;;  %v956_v43 = vadd.f32 %v955_v40, %v925_v42  ;;  %v932_v11 = vsel %vm831_vm3, 1.0, %v1614_v24  ;;  %v869_v3 = vsel %vm837_vm9, %v1955_v47, 0.0 }
 0x1c2   : > { %vm839_vm11 = vcmp.ge.f32.partialorder %v1970_v6, %v2027_v28  ;;  %v870_v13 = vsel %vm838_vm10, %v1963_v60, 0.0  ;;  %v935_v29 = vsel %vm834_vm6, 1.0, %v1614_v24  ;;  %vm840_vm12 = vcmp.ge.f32.partialorder %v1979_v19, %v2027_v28 }
 0x1c3   : > { %v889_v27 = vadd.f32 %v888_v17, %v858_v61  ;;  %v957_v50 = vadd.f32 %v956_v43, %v926_v48  ;;  %v934_v61 = vsel %vm833_vm5, 1.0, %v1614_v24  ;;  %v871_v12 = vsel %vm839_vm11, %v1970_v6, 0.0 }
 0x1c4   : > { %v872_v25 = vsel %vm840_vm12, %v1979_v19, 0.0  ;;  %vm841_vm13 = vcmp.ge.f32.partialorder %v1977_v18, %v2027_v28  ;;  %v938_v34 = vsel %vm837_vm9, 1.0, %v1614_v24  ;;  %v939_v46 = vsel %vm838_vm10, 1.0, %v1614_v24 }
 0x1c5   : > { %v890_v31 = vadd.f32 %v889_v27, %v859_v56  ;;  %v958_v33 = vadd.f32 %v957_v50, %v927_v54  ;;  %vm842_vm14 = vcmp.ge.f32.partialorder %v1987_v32, %v2027_v28  ;;  %v940_v47 = vsel %vm839_vm11, 1.0, %v1614_v24 }
 0x1c6   : > { %v941_v50 = vsel %vm840_vm12, 1.0, %v1614_v24  ;;  %vm843_vm15 = vcmp.ge.f32.partialorder %v1994_v45, %v2027_v28  ;;  %v942_v54 = vsel %vm841_vm13, 1.0, %v1614_v24  ;;  %vm844_vm0 = vcmp.ge.f32.partialorder %v2001_v59, %v2027_v28 }
 0x1c7   : > { %v891_v41 = vadd.f32 %v890_v31, %v860_v0  ;;  %v959_v58 = vadd.f32 %v958_v33, %v928_v37  ;;  %v936_v31 = vsel %vm835_vm7, 1.0, %v1614_v24  ;;  %v937_v0 = vsel %vm836_vm8, 1.0, %v1614_v24 }
 0x1c8   : > { %vm845_vm1 = vcmp.ge.f32.partialorder %v2003_v62, %v2027_v28  ;;  %vm846_vm2 = vcmp.ge.f32.partialorder %v2010_v7, %v2027_v28 }
 0x1c9   : > { %v892_v44 = vadd.f32 %v891_v41, %v861_v9  ;;  %v960_v2 = vadd.f32 %v959_v58, %v929_v1  ;;  %v873_v9 = vsel %vm841_vm13, %v1977_v18, 0.0  ;;  %v945_v18 = vsel %vm844_vm0, 1.0, %v1614_v24 }
 0x1cb   : > { %v893_v53 = vadd.f32 %v892_v44, %v862_v21  ;;  %v961_v5 = vadd.f32 %v960_v2, %v930_v36  ;;  %v874_v21 = vsel %vm842_vm14, %v1987_v32, 0.0  ;;  %v943_v32 = vsel %vm842_vm14, 1.0, %v1614_v24 }
 0x1cc   : > { %v947_v2 = vsel %vm846_vm2, 1.0, %v1614_v24 }
 0x1cd   : > { %v894_v55 = vadd.f32 %v893_v53, %v863_v16  ;;  %v962_v38 = vadd.f32 %v961_v5, %v931_v26  ;;  %v875_v16 = vsel %vm843_vm15, %v1994_v45, 0.0  ;;  %v878_v5 = vsel %vm846_vm2, %v2010_v7, 0.0 }
 0x1cf   : > { %v895_v63 = vadd.f32 %v894_v55, %v864_v22  ;;  %v963_v14 = vadd.f32 %v962_v38, %v932_v11  ;;  %v944_v55 = vsel %vm843_vm15, 1.0, %v1614_v24  ;;  %v876_v22 = vsel %vm844_vm0, %v2001_v59, 0.0 }
 0x1d1   : > { %v896_v4 = vadd.f32 %v895_v63, %v865_v35  ;;  %v964_v17 = vadd.f32 %v963_v14, %v933_v15  ;;  %v946_v63 = vsel %vm845_vm1, 1.0, %v1614_v24  ;;  %v877_v35 = vsel %vm845_vm1, %v2003_v62, 0.0 }
 0x1d3   : > { %v897_v8 = vadd.f32 %v896_v4, %v866_v52  ;;  %v965_v23 = vadd.f32 %v964_v17, %v934_v61 }
 0x1d5   : > { %v898_v10 = vadd.f32 %v897_v8, %v867_v51  ;;  %v966_v56 = vadd.f32 %v965_v23, %v935_v29 }
 0x1d7   : > { %v899_v49 = vadd.f32 %v898_v10, %v868_v57  ;;  %v967_v39 = vadd.f32 %v966_v56, %v936_v31 }
 0x1d9   : > { %v900_v20 = vadd.f32 %v899_v49, %v869_v3  ;;  %v968_v41 = vadd.f32 %v967_v39, %v937_v0 }
 0x1db   : > { %v901_v27 = vadd.f32 %v900_v20, %v870_v13  ;;  %v969_v42 = vadd.f32 %v968_v41, %v938_v34  ;;  %v1009_v20 = vld [vmem:[%s2375_s5] sm:$0x1] }
 0x1dd   : > { %v902_v30 = vadd.f32 %v901_v27, %v871_v12  ;;  %v970_v44 = vadd.f32 %v969_v42, %v939_v46 }
 0x1df   : > { %v903_v40 = vadd.f32 %v902_v30, %v872_v25  ;;  %v971_v48 = vadd.f32 %v970_v44, %v940_v47 }
 0x1e1   : > { %v904_v43 = vadd.f32 %v903_v40, %v873_v9  ;;  %v972_v53 = vadd.f32 %v971_v48, %v941_v50 }
 0x1e3   : > { %v905_v60 = vadd.f32 %v904_v43, %v874_v21  ;;  %v973_v6 = vadd.f32 %v972_v53, %v942_v54 }
 0x1e5   : > { %v906_v19 = vadd.f32 %v905_v60, %v875_v16  ;;  %v974_v33 = vadd.f32 %v973_v6, %v943_v32 }
 0x1e7   : > { %v975_v37 = vadd.f32 %v974_v33, %v944_v55  ;;  %v907_v45 = vadd.f32 %v906_v19, %v876_v22 }
 0x1e9   : > { %v976_v58 = vadd.f32 %v975_v37, %v945_v18  ;;  %v908_v4 = vadd.f32 %v907_v45, %v877_v35 }
 0x1eb   : > { %v977_v1 = vadd.f32 %v976_v58, %v946_v63  ;;  %v909_v59 = vadd.f32 %v908_v4, %v878_v5 }
 0x1ed   : > { %v978_v36 = vadd.f32 %v977_v1, %v947_v2  ;;  %v910_v51 = vrot.slane %v909_v59, 4 }
 0x1ef   : > { %v979_v52 = vrot.slane %v978_v36, 4  ;;  %v911_v10 = vadd.f32 %v910_v51, %v909_v59 }
 0x1f1   : > { %v980_v8 = vadd.f32 %v979_v52, %v978_v36  ;;  %v912_v14 = vrot.slane %v911_v10, 2 }
 0x1f3   : > { %v981_v26 = vrot.slane %v980_v8, 2  ;;  %v913_v62 = vadd.f32 %v912_v14, %v911_v10 }
 0x1f5   : > { %v982_v38 = vadd.f32 %v981_v26, %v980_v8  ;;  %v914_v24 = vrot.slane %v913_v62, 1 }
 0x1f7   : > { %v983_v28 = vrot.slane %v982_v38, 1  ;;  %v915_v49 = vadd.f32 %v914_v24, %v913_v62 }
 0x1f9   : > { %v984_v11 = vadd.f32 %v983_v28, %v982_v38 }
 0x1fb   : > { %v986_v57 = vmax.f32 %v984_v11, 1.0  ;;  %vm985_vm3 = vcmp.gt.f32.partialorder %v984_v11, 0.0 }
 0x1fd   : > { %1457 = vrcp.f32 %v986_v57 }
 0x20a   : > { %v1458_v15 = vpop.eup %1457 }
 0x20b   : > { %v988_v3 = vmul.f32 %v1458_v15, %v915_v49 }
 0x20d   : > { %v989_v7 = vsel %vm985_vm3, %v988_v3, 0.0 }
 0x20e   : > { %vm990_vm4 = vcmp.ne.f32.partialorder %v989_v7, %v989_v7  ;;  %v1245_v17 = vpack.c.bf16 %v989_v7, %v989_v7 }
 0x20f   : > { %vm1242_vm5 = vmneg %vm990_vm4 }
 0x210   : > { %vm1244_vm6 = vmpackc.low %vm1242_vm5, %vm1242_vm5 }
 0x211   : > { %1349 = vmatmul.mubr.msk.bf16.vlgmr.msra.gmra.mxu1 %vm1244_vm6, %v1245_v17 }
 0x2d1   : > { %v1092_v61 = vpop.f32.mrf.mxu1 }
 0x2d2   : > { %v1093_v13 = vadd.f32 %v1092_v61, %v1009_v20 }
 0x2d3   : > { %v1350_v23 = vpop.f32.mrf.mxu1 }
 0x2d4   : > { %1098 = vst [vmem:[%s298_s19] sm:$0x1] %v1093_v13 }
 0x2d5   : > { %v1095_v27 = vpop.f32.mrf.mxu1 }
 0x2d6   : > { %1552 = shalt.err (!%p1549_p3)
}
 0x2d7   : > { %s1553_s28 = scalar_lea.hbm %s2327_s22, 16  ;;  %s1557_s14 = scalar_lea.hbm %s2376_s6, 32 }
 0x2d8   : > { %p1554_p11 = scmp.ne.s32.totalorder %s2327_s22, %s1553_s28  ;;  %p1558_p4 = scmp.lt.s32.totalorder %s2327_s22, %s2376_s6 }
 0x2d9   : > { %p1559_p6 = scmp.lt.s32.totalorder %s1557_s14, %s1553_s28 }
 0x2da   : > { %p1555_p9 = pnand %p1554_p11, %p2393_p2 }
 0x2db   : > { %p1560_p8 = por %p1559_p6, %p1558_p4 }
 0x2dc   : > { %p1556_p1 = pneg %p1555_p9 }
 0x2de   : > { %p1561_p5 = pnand %p1560_p8, %p1556_p1 }
 0x2e0   : > { %1564 = shalt.err (!%p1561_p5)
}
 0x2e1   : > { %1362 = dma.vmem_to_hbm [thread:$0]  (%p2393_p2), %s2329_s12, 16, %s2327_s22, %s1100_s21   ;;  %v1351_v29 = vpop.f32.mrf.mxu1 }
 0x2e2 PF: > { %s1124_s18 = sand.u32 1, %s1595_s23   ;;  %p2394_p7 = scmp.ne.s32.totalorder %s2383_s29, 0 }
 0x2e3   : > { %p2395_p12 = scmp.ge.s32.totalorder %s1607_s26, 2  ;;  %s1125_s19 = scalar_lea.sflag [#allocation5], %s1124_s18 }
 0x2e5   : > { %p1376_p13 = pnand %p2395_p12, %p2394_p7 }
 0x2e7   : > { %p1377_p0 = pneg %p1376_p13 }
 0x2e9   : > { %1590 = dma.done.wait (%p1377_p0), %s1125_s19, 16  }
 0x2ea   : > { %1592 = vsyncadd (%p1377_p0), %s1125_s19, 4294967280  ;;  %p21_p10 = scmp.ge.s32.totalorder %s1733_s20, 4   ;;  %s2396_s23 = smov %s1599_s24 }
 0x2eb   : > { %s2397_s24 = smov %s1603_s25  ;;  %s2398_s25 = smov %s1749_s7 }
 0x2ec   : > { %s2399_s26 = smov %s1733_s20  ;;  %23 = sbr.rel (!%p21_p10) target bundleno = 8 (0x8), region = 97 }
 0x2f1   :  { %1129 = vsyncpa [#allocation4], 1 }
 0x2f2   :  { %1131 = vsyncpa [#allocation4 + $0x1], 1 }
 0x2f3   :  { %1132 = vsyncpa [#allocation7], 1 }
 0x2f4   :  { %1133 = vsyncpa [#allocation5], 1 }
 0x2f5   :  { %1135 = vsyncpa [#allocation5 + $0x1], 1 }

</bundles_post_ra>
